<compile_context>
chip_gen: v7x
topology: tpu7x:2x2x1
jax: 0.10.0
libtpu: 0.0.40
codegen_flags: <defaults>
</compile_context>

<pallas_src>
import numpy as np
import jax
import jax.numpy as jnp
from jax.experimental import pallas as pl
from jax.experimental.pallas import tpu as pltpu


def _round_up(x, m):
    return ((x + m - 1) // m) * m


def _physical_vmem_bytes():
    """Per-core VMEM capacity; conservative 64 MiB (v7x) if unqueryable."""
    if hasattr(pltpu, "get_tpu_info"):
        try:
            v = getattr(pltpu.get_tpu_info(), "vmem_capacity_bytes", None)
            if v:
                return int(v)
        except Exception:
            pass
    return 64 * 2 ** 20


# ----------------------------- Pallas kernel ------------------------------ #
def _make_kernel(num_lc):
    """fc1 (MXU) -> [sigmoid (EUP) -> block-diag LocallyConnected (MXU)]*L.

    Activations use the compact (node, hidden) lane packing: column k*m + i
    holds (node k, hidden unit i); every layer width is padded once to a
    multiple of 128 so all loads/stores are lane-dense.
    """

    def kernel(x_ref, w1_ref, b1_ref, *rest):
        out_ref = rest[-1]
        lc_refs = rest[:-1]

        # fc1: [bt, d_pad] @ [d_pad, W1_pad]; bf16 operands, f32 accumulation.
        h = jnp.dot(x_ref[...], w1_ref[...],
                    preferred_element_type=jnp.float32)
        h = h + b1_ref[...]

        # LocallyConnected layers: sigmoid (EUP, f32) then a tiny
        # block-diagonal matmul on the MXU.  Padded node lanes carry zero
        # weight rows, so sigmoid(0)=0.5 on padding never leaks into outputs.
        for l in range(num_lc):
            s = jax.nn.sigmoid(h)
            bd_ref = lc_refs[2 * l]          # [W_in_pad, W_out_pad] bf16
            bias_ref = lc_refs[2 * l + 1]    # [1, W_out_pad]        f32
            h = jnp.dot(s.astype(bd_ref.dtype), bd_ref[...],
                        preferred_element_type=jnp.float32) + bias_ref[...]

        out_ref[...] = h.astype(out_ref.dtype)

    return kernel


# ------------------------------ glue (JAX) -------------------------------- #
def dagma_mlp_dce_forward(x, params, dims, *, batch_tile=256):
    """Pallas implementation of DagmaMLP_DCE.forward."""
    n, d = x.shape
    assert d == dims[0] and dims[-1] == 1 and len(dims) >= 2

    d_pad = _round_up(d, 128)
    widths = [d * m for m in dims[1:]]                 # fc1 / LC output widths
    widths_pad = [_round_up(w, 128) for w in widths]
    out_pad = widths_pad[-1]
    num_lc = len(dims) - 2

    # ---- repack parameters into the compact, lane-padded layout. ----
    # fc1.weight is [d*m1, d] with row r = node*m1 + hidden (the order that
    # torch's .view(-1, d, m1) expects) -> transpose and pad once.
    w1 = jnp.pad(params["fc1_w"].astype(jnp.float32).T,
                 ((0, d_pad - d), (0, widths_pad[0] - widths[0])))
    w1 = w1.astype(jnp.bfloat16)
    b1 = jnp.pad(params["fc1_b"].astype(jnp.float32),
                 (0, widths_pad[0] - widths[0])).reshape(1, widths_pad[0])

    flat_inputs = [w1, b1]
    for l, (w, b) in enumerate(params["fc2"]):         # w [d, m_in, m_out]
        m_in, m_out = int(w.shape[1]), int(w.shape[2])
        wn = np.zeros((d, m_in, d, m_out), np.float32)
        wn[np.arange(d), :, np.arange(d), :] = np.asarray(w, np.float32)
        bd = wn.reshape(d * m_in, d * m_out)           # block-diagonal
        bd = np.pad(bd, ((0, widths_pad[l] - d * m_in),
                         (0, widths_pad[l + 1] - d * m_out)))
        flat_inputs.append(jnp.asarray(bd, dtype=jnp.bfloat16))
        bias = np.pad(np.asarray(b, np.float32).reshape(-1),
                      (0, widths_pad[l + 1] - d * m_out)).reshape(1, -1)
        flat_inputs.append(jnp.asarray(bias, dtype=jnp.float32))

    weight_bytes = sum(int(a.size) * a.dtype.itemsize for a in flat_inputs)
    max_w_pad = max(widths_pad)

    # ---- batch tiling: multiple of 16 (bf16 sublanes), >= 8 grid steps when
    # n permits (>= 4 per v7x TensorCore), shrunk to fit the VMEM budget. ----
    def vmem_need(bt_):
        io = 2 * (bt_ * d_pad * 2 + bt_ * out_pad * 4)   # dbl-buffered x/out
        inter = 4 * bt_ * max_w_pad * 4                  # h, s, casts, slack
        return 2 * weight_bytes + io + inter

    phys_vmem = _physical_vmem_bytes()
    budget = max(16 * 2 ** 20, phys_vmem - 12 * 2 ** 20)

    n16 = _round_up(n, 16)
    steps_target = min(8, max(1, n16 // 16))
    bt = min(batch_tile, max(16, (n16 // steps_target) // 16 * 16))
    bt = max(16, _round_up(bt, 16))
    while vmem_need(bt) > budget and bt > 16:
        bt = max(16, _round_up(bt // 2, 16))
    n_pad = _round_up(n, bt)

    # Lane-dense, zero-padded input; bf16 halves DMA and feeds the MXU.
    xp = jnp.pad(x.astype(jnp.float32),
                 ((0, n_pad - n), (0, d_pad - d))).astype(jnp.bfloat16)

    # ---- effective (unpadded) cost estimate + explicit VMEM budget. ----
    flops = 2 * n * d * widths[0]                        # fc1
    for l in range(num_lc):
        flops += 2 * n * widths[l] * dims[l + 2]         # per-node LC matmuls
    transcendentals = n * sum(widths[:num_lc])           # sigmoids
    bytes_accessed = int(n * d * (2 + 4) + weight_bytes)
    vmem_limit = int(min(budget, max(32 * 2 ** 20, 2 * vmem_need(bt))))

    kernel = _make_kernel(num_lc)
    in_specs = [pl.BlockSpec((bt, d_pad), lambda i: (i, 0))]
    for arr in flat_inputs:
        # Grid-invariant weights (~130 KB total at these dims): full-array
        # blocks; the pipeline fetches them once since the block index never
        # changes, so default buffering is fine.
        in_specs.append(pl.BlockSpec(arr.shape, lambda i: (0, 0)))

    out = pl.pallas_call(
        kernel,
        out_shape=jax.ShapeDtypeStruct((n_pad, out_pad), jnp.float32),
        grid=(n_pad // bt,),
        in_specs=in_specs,
        out_specs=pl.BlockSpec((bt, out_pad), lambda i: (i, 0)),
        compiler_params=pltpu.CompilerParams(
            dimension_semantics=("parallel",),
            vmem_limit_bytes=vmem_limit),
        cost_estimate=pl.CostEstimate(
            flops=int(flops),
            transcendentals=int(transcendentals),
            bytes_accessed=bytes_accessed),
    )(xp, *flat_inputs)

    return out[:n, :d]


# --------------------------- pure-JAX reference ---------------------------- #
def reference_forward(x, params, dims):
    h = x @ params["fc1_w"].T + params["fc1_b"]
    h = h.reshape(-1, dims[0], dims[1])
    for (w, b) in params["fc2"]:
        h = jax.nn.sigmoid(h)
        h = jnp.einsum("ndi,dio->ndo", h, w) + b[None]
    return h.squeeze(axis=2)


# ---------------------------------- main ----------------------------------- #
if __name__ == "__main__":
    key = jax.random.PRNGKey(0)
    dims = [8, 16, 1]                  # [d, hidden m1, 1]  (dims[-1] == 1)
    d, m1 = dims[0], dims[1]
    n = 1024                           # bt=128 and 8 grid steps (4 per v7x TC)

    k1, k2, k3, k4, k5 = jax.random.split(key, 5)

    # Parameter shapes follow DagmaMLP_DCE.__init__:
    #   fc1: Linear(d, d*m1)            -> weight [d*m1, d], bias [d*m1]
    #   fc2: LocallyConnected(d, m1, 1) -> weight [d, m1, 1], bias [d, 1]
    # NOTE: the module zero-inits fc1; small random values are used here so
    # the kernel exercises a nontrivial compute path (shapes identical).
    fc1_w = 0.1 * jax.random.normal(k1, (d * m1, d), dtype=jnp.float32)
    fc1_b = 0.1 * jax.random.normal(k2, (d * m1,), dtype=jnp.float32)
    bound = 1.0 / np.sqrt(m1)
    lc_w = jax.random.uniform(k3, (d, m1, 1), minval=-bound, maxval=bound,
                              dtype=jnp.float32)
    lc_b = jax.random.uniform(k4, (d, 1), minval=-bound, maxval=bound,
                              dtype=jnp.float32)
    params = {"fc1_w": fc1_w, "fc1_b": fc1_b, "fc2": [(lc_w, lc_b)]}

    x = jax.random.normal(k5, (n, d), dtype=jnp.float32)

    out = dagma_mlp_dce_forward(x, params, dims, batch_tile=256)
    out = jax.block_until_ready(out)

    ref = reference_forward(x, params, dims)
    # bf16 MXU operands (f32 accumulation) vs f32 reference -> loosened tol.
    np.testing.assert_allclose(np.asarray(out), np.asarray(ref),
                               rtol=2e-2, atol=2e-2)
    print("KERNEL_OK")
</pallas_src>

<mosaic_0001>
module attributes {stable_mosaic.version = 11 : i64} {
  func.func @kernel(%arg0: i32, %arg1: memref<128x128xbf16, #tpu.memory_space<vmem>>, %arg2: memref<128x128xbf16, #tpu.memory_space<vmem>>, %arg3: memref<1x128xf32, #tpu.memory_space<vmem>>, %arg4: memref<128x128xbf16, #tpu.memory_space<vmem>>, %arg5: memref<1x128xf32, #tpu.memory_space<vmem>>, %arg6: memref<128x128xf32, #tpu.memory_space<vmem>>) attributes {dimension_semantics = [#tpu.dimension_semantics<parallel>], iteration_bounds = array<i64: 8>, scalar_prefetch = 0 : i64, scratch_operands = 0 : i64, tpu.core_type = #tpu.core_type<tc>, window_params = [{transform_indices = @transform_0, window_bounds = array<i64: 128, 128>}, {pipeline_mode = #tpu.pipeline_mode<synchronous>, transform_indices = @transform_1, window_bounds = array<i64: 128, 128>}, {pipeline_mode = #tpu.pipeline_mode<synchronous>, transform_indices = @transform_2, window_bounds = array<i64: 1, 128>}, {pipeline_mode = #tpu.pipeline_mode<synchronous>, transform_indices = @transform_3, window_bounds = array<i64: 128, 128>}, {pipeline_mode = #tpu.pipeline_mode<synchronous>, transform_indices = @transform_4, window_bounds = array<i64: 1, 128>}, {transform_indices = @transform_5, window_bounds = array<i64: 128, 128>}]} {
    %c0 = arith.constant 0 : index
    %c0_0 = arith.constant 0 : index
    %0 = vector.load %arg1[%c0, %c0_0] : memref<128x128xbf16, #tpu.memory_space<vmem>>, vector<128x128xbf16>
    %c0_1 = arith.constant 0 : index
    %c0_2 = arith.constant 0 : index
    %1 = vector.load %arg2[%c0_1, %c0_2] : memref<128x128xbf16, #tpu.memory_space<vmem>>, vector<128x128xbf16>
    %cst = arith.constant dense<0.000000e+00> : vector<128x128xf32>
    %2 = tpu.matmul %0, %1, %cst {dimension_numbers = #tpu.dot_dimension_numbers<[1], [0], [0], [1], [0, 0, 1, 1], [], []>} : vector<128x128xbf16>, vector<128x128xbf16>, vector<128x128xf32> -> vector<128x128xf32>
    %c0_3 = arith.constant 0 : index
    %c0_4 = arith.constant 0 : index
    %3 = vector.load %arg3[%c0_3, %c0_4] : memref<1x128xf32, #tpu.memory_space<vmem>>, vector<1x128xf32>
    %4 = vector.broadcast %3 : vector<1x128xf32> to vector<128x128xf32>
    %5 = arith.addf %2, %4 : vector<128x128xf32>
    %6 = arith.negf %5 : vector<128x128xf32>
    %7 = math.exp %6 : vector<128x128xf32>
    %cst_5 = arith.constant 1.000000e+00 : f32
    %8 = vector.broadcast %cst_5 : f32 to vector<128x128xf32>
    %9 = arith.addf %8, %7 : vector<128x128xf32>
    %10 = arith.divf %8, %9 : vector<128x128xf32>
    %11 = arith.truncf %10 : vector<128x128xf32> to vector<128x128xbf16>
    %c0_6 = arith.constant 0 : index
    %c0_7 = arith.constant 0 : index
    %12 = vector.load %arg4[%c0_6, %c0_7] : memref<128x128xbf16, #tpu.memory_space<vmem>>, vector<128x128xbf16>
    %cst_8 = arith.constant dense<0.000000e+00> : vector<128x128xf32>
    %13 = tpu.matmul %11, %12, %cst_8 {dimension_numbers = #tpu.dot_dimension_numbers<[1], [0], [0], [1], [0, 0, 1, 1], [], []>} : vector<128x128xbf16>, vector<128x128xbf16>, vector<128x128xf32> -> vector<128x128xf32>
    %c0_9 = arith.constant 0 : index
    %c0_10 = arith.constant 0 : index
    %14 = vector.load %arg5[%c0_9, %c0_10] : memref<1x128xf32, #tpu.memory_space<vmem>>, vector<1x128xf32>
    %15 = vector.broadcast %14 : vector<1x128xf32> to vector<128x128xf32>
    %16 = arith.addf %13, %15 : vector<128x128xf32>
    %c0_11 = arith.constant 0 : index
    %c0_12 = arith.constant 0 : index
    %17 = vector.load %arg6[%c0_11, %c0_12] : memref<128x128xf32, #tpu.memory_space<vmem>>, vector<128x128xf32>
    tpu.vector_store %arg6[%c0_11, %c0_12], %16 {strides = array<i32>} : memref<128x128xf32, #tpu.memory_space<vmem>>, vector<128x128xf32>,
    return
  }
  func.func @transform_0(%arg0: i32) -> (i32, i32) {
    %c0_i32 = arith.constant 0 : i32
    %c0_i32_0 = arith.constant 0 : i32
    return %arg0, %c0_i32 : i32, i32
  }
  func.func @transform_1(%arg0: i32) -> (i32, i32) {
    %c0_i32 = arith.constant 0 : i32
    %c0_i32_0 = arith.constant 0 : i32
    %c0_i32_1 = arith.constant 0 : i32
    return %c0_i32, %c0_i32_0 : i32, i32
  }
  func.func @transform_2(%arg0: i32) -> (i32, i32) {
    %c0_i32 = arith.constant 0 : i32
    %c0_i32_0 = arith.constant 0 : i32
    %c0_i32_1 = arith.constant 0 : i32
    return %c0_i32, %c0_i32_0 : i32, i32
  }
  func.func @transform_3(%arg0: i32) -> (i32, i32) {
    %c0_i32 = arith.constant 0 : i32
    %c0_i32_0 = arith.constant 0 : i32
    %c0_i32_1 = arith.constant 0 : i32
    return %c0_i32, %c0_i32_0 : i32, i32
  }
  func.func @transform_4(%arg0: i32) -> (i32, i32) {
    %c0_i32 = arith.constant 0 : i32
    %c0_i32_0 = arith.constant 0 : i32
    %c0_i32_1 = arith.constant 0 : i32
    return %c0_i32, %c0_i32_0 : i32, i32
  }
  func.func @transform_5(%arg0: i32) -> (i32, i32) {
    %c0_i32 = arith.constant 0 : i32
    %c0_i32_0 = arith.constant 0 : i32
    return %arg0, %c0_i32 : i32, i32
  }
}

</mosaic_0001>

<bundles_post_ra>
// kernel: tpu_custom_call.1
= control target key start
LH: loop header
LB: loop body
LE: loop exit
PB: predicated region body
PF: predicated region fallthrough
CT: control target
= control target key end

     0   :  { %10 = vsyncpa [#allocation3], 0  ;;  %s1702_s0 = inlined_call_operand.hbm [shape: bf16[1024,128], index: 0, kind: input, shape index: {}]   ;;  %s1703_s1 = inlined_call_operand.hbm [shape: bf16[128,128], index: 1, kind: input, shape index: {}]   ;;  %s1704_s2 = inlined_call_operand.vmem [shape: f32[1,128], index: 2, kind: input, shape index: {}]   ;;  %s1705_s3 = inlined_call_operand.hbm [shape: bf16[128,128], index: 3, kind: input, shape index: {}]   ;;  %s1706_s4 = inlined_call_operand.vmem [shape: f32[1,128], index: 4, kind: input, shape index: {}]   ;;  %s1707_s5 = inlined_call_operand.hbm [shape: f32[1024,128], index: 5, kind: output, shape index: {}]  }
   0x1   :  { %12 = vsyncpa [#allocation3 + $0x1], 0 }
   0x2   :  { %13 = vsyncpa [#allocation6], 0 }
   0x3   :  { %14 = vsyncpa [#allocation4], 0 }
   0x4   :  { %16 = vsyncpa [#allocation4 + $0x1], 0  ;;  %s1414_s18 = smov 0   ;;  %s1416_s19 = smov 0  }
   0x5   :  { %s1418_s20 = smov 0   ;;  %s1420_s21 = smov 0  }
   0x6 LB: > { %s1435_s22 = sadd.s32 4294967295, %s1374_s21   ;;  %s901_s23 = sadd.s32 4294967294, %s1374_s21   ;;  %s1374_s21 = sphi %s1420_s21, %s1726_s21   ;;  %s1370_s20 = sphi %s1418_s20, %s1725_s20   ;;  %s1366_s19 = sphi %s1416_s19, %s1724_s19   ;;  %s1362_s18 = sphi %s1414_s18, %s1723_s18  }
   0x7   : > { %p42_p0 = scmp.ne.s32.totalorder %s1366_s19, %s1362_s18  ;;  %p1708_p1 = scmp.eq.s32.totalorder %s1435_s22, 0 }
   0x8   : > { %p156_p3 = scmp.eq.s32.totalorder %s901_s23, 7  ;;  %p902_p5 = scmp.ge.s32.totalorder %s1374_s21, 1 }
   0x9   : > { %p1444_p4 = por %p1708_p1, %p42_p0  ;;  %p163_p7 = scmp.lt.s32.totalorder %s1374_s21, 9 }
   0xa   : > { %p1449_p6 = por %p156_p3, %p42_p0  ;;  %s1376_s27 = smov [#allocation5]  }
   0xb   : > { %s1711_s24 = scalar_select %p1444_p4, 1, 0 }
   0xc   : > { %s1712_s25 = scalar_select %p1449_p6, 1, 0 }
   0xd   : > { %p1454_p8 = pnand %p902_p5, %p163_p7  ;;  %s175_s28 = sshll.u32 %s1376_s27, 4  ;;  %s176_s28 = int_to_ptr.vmem [resolvable:$true] %s175_s28 }
   0xe   : > { %s1377_s30 = smov [#allocation7]   ;;  %s1218_s9 = scalar_lea.hbm %s1703_s1, 1024 }
   0xf   : > { %s1713_s26 = scalar_select %p1454_p8, 1, 0 }
  0x10   : > { %p1071_p9 = pneg %p1454_p8  ;;  %s191_s6 = sshll.u32 %s1377_s30, 4  ;;  %s1466_s6 = int_to_ptr.vmem [resolvable:$true] %s191_s6 }
  0x11   : > { %p1219_p11 = scmp.ne.s32.totalorder %s1703_s1, %s1218_s9  ;;  %p1225_p3 = scmp.lt.u32.totalorder %s1218_s9, %s1703_s1 }
  0x12   : > { %p1462_p10 = pnand %p1071_p9, %p1708_p1 }
  0x14   : > { %p1220_p12 = pneg %p1462_p10 }
  0x16   : > { %p1221_p13 = pnand %p1220_p12, %p1219_p11 }
  0x18   : > { %p1222_p0 = pneg %p1221_p13 }
  0x1a   : > { %p1227_p5 = pnand %p1225_p3, %p1222_p0 }
  0x1c   : > { %1230 = shalt.err (!%p1227_p5)
}
  0x1d   : > { %s1231_s14 = scalar_lea.vmem %s176_s28, 1024  ;;  %p1239_p2 = scmp.lt.s32.totalorder %s176_s28, %s176_s28 }
  0x1e   : > { %p1232_p7 = scmp.ne.s32.totalorder %s176_s28, %s1231_s14  ;;  %p1240_p6 = scmp.lt.s32.totalorder %s1231_s14, %s1231_s14 }
  0x20   : > { %p1234_p9 = pnand %p1232_p7, %p1220_p12  ;;  %p1241_p4 = por %p1240_p6, %p1239_p2 }
  0x22   : > { %p1235_p1 = pneg %p1234_p9 }
  0x24   : > { %p1242_p8 = pnand %p1241_p4, %p1235_p1 }
  0x26   : > { %1245 = shalt.err (!%p1242_p8)
}
  0x27   : > { %s1378_s15 = smov 64   ;;  %s1379_s16 = smov 4  }
  0x28   : > { %1074 = dma.hbm_to_vmem [thread:$0]  (!%p1462_p10), %s1703_s1, 1024, %s176_s28, [#allocation6], %s1378_s15, %s1378_s15, %s1379_s16  }
  0x29   : > { %s1246_s7 = scalar_lea.hbm %s1705_s3, 1024 }
  0x2a   : > { %p1247_p1 = scmp.ne.s32.totalorder %s1705_s3, %s1246_s7  ;;  %p1253_p6 = scmp.lt.u32.totalorder %s1246_s7, %s1705_s3 }
  0x2c   : > { %p1249_p2 = pnand %p1247_p1, %p1220_p12 }
  0x2e   : > { %p1250_p4 = pneg %p1249_p2 }
  0x30   : > { %p1255_p8 = pnand %p1253_p6, %p1250_p4 }
  0x32   : > { %1258 = shalt.err (!%p1255_p8)
}
  0x33   : > { %s1259_s28 = scalar_lea.vmem %s1466_s6, 1024  ;;  %p1267_p3 = scmp.lt.s32.totalorder %s1466_s6, %s1466_s6 }
  0x34   : > { %p1260_p11 = scmp.ne.s32.totalorder %s1466_s6, %s1259_s28  ;;  %p1268_p5 = scmp.lt.s32.totalorder %s1259_s28, %s1259_s28 }
  0x36   : > { %p1262_p13 = pnand %p1260_p11, %p1220_p12  ;;  %p1269_p7 = por %p1268_p5, %p1267_p3 }
  0x38   : > { %p1263_p0 = pneg %p1262_p13 }
  0x3a   : > { %p1270_p9 = pnand %p1269_p7, %p1263_p0 }
  0x3c   : > { %1273 = shalt.err (!%p1270_p9)
}
  0x3d   : > { %1077 = dma.hbm_to_vmem [thread:$0]  (!%p1462_p10), %s1705_s3, 1024, %s1466_s6, [#allocation6], %s1378_s15, %s1378_s15, %s1379_s16  }
  0x3e   : > { %s1522_s29 = sadd.s32 1, %s1374_s21   ;;  %s29_s14 = sadd.s32 1, %s1370_s20 }
  0x3f   : > { %s26_s17 = ssub.s32 %s1374_s21, %s1522_s29  ;;  %p36_p12 = scmp.ne.s32.totalorder %s1370_s20, %s1366_s19 }
  0x40   : > { %p27_p1 = scmp.eq.s32.totalorder %s26_s17, 0  ;;  %p37_p2 = scmp.eq.s32.totalorder %s1374_s21, 0 }
  0x41   : > { %p1715_p4 = scmp.eq.s32.totalorder %s1435_s22, 7  ;;  %p1088_p8 = scmp.lt.s32.totalorder %s1374_s21, 8 }
  0x42   : > { %s1538_s27 = scalar_select %p27_p1, %s1370_s20, %s29_s14  }
  0x43   : > { %p1532_p6 = por %p1715_p4, %p36_p12  ;;  %p38_p11 = por %p37_p2, %p36_p12 }
  0x44   : > { %s208_s30 = sand.u32 1, %s1370_s20   ;;  %s961_s6 = sshll.u32 %s1374_s21, 10 }
  0x45   : > { %s906_s7 = sshll.u32 %s208_s30, 6  ;;  %s1545_s10 = scalar_lea.hbm %s1702_s0, %s961_s6 }
  0x46   : > { %s212_s11 = scalar_lea.vmem [#allocation2], %s906_s7  ;;  %p1549_p10 = pnand %p1088_p8, %p38_p11 }
  0x47   : > { %s219_s28 = sshll.u32 %s212_s11, 4  ;;  %s1553_s13 = scalar_lea.sflag [#allocation3], %s208_s30  ;;  %s1547_s28 = int_to_ptr.vmem [resolvable:$true] %s219_s28 }
  0x48   : > { %s1274_s14 = scalar_lea.hbm %s1545_s10, 1024  ;;  %p1276_p0 = pneg %p1549_p10 }
  0x49   : > { %p1275_p13 = scmp.ne.s32.totalorder %s1545_s10, %s1274_s14  ;;  %s1279_s6 = scalar_lea.hbm %s1702_s0, 8192 }
  0x4a   : > { %p1280_p7 = scmp.lt.u32.totalorder %s1545_s10, %s1702_s0  ;;  %p1281_p9 = scmp.lt.u32.totalorder %s1279_s6, %s1274_s14 }
  0x4b   : > { %p1277_p3 = pnand %p1276_p0, %p1275_p13  ;;  %p1283_p1 = scmp.lt.u32.totalorder %s1274_s14, %s1545_s10 }
  0x4c   : > { %p1282_p12 = por %p1281_p9, %p1280_p7 }
  0x4d   : > { %p1278_p5 = pneg %p1277_p3 }
  0x4e   : > { %p1284_p2 = por %p1283_p1, %p1282_p12 }
  0x50   : > { %p1285_p4 = pnand %p1284_p2, %p1278_p5 }
  0x52   : > { %1288 = shalt.err (!%p1285_p4)
}
  0x53   : > { %s1289_s30 = scalar_lea.vmem %s1547_s28, 1024  ;;  %s1380_s11 = smov [#allocation2]  }
  0x54   : > { %p1290_p8 = scmp.ne.s32.totalorder %s1547_s28, %s1289_s30  ;;  %s1294_s17 = sshll.u32 %s1380_s11, 4  ;;  %s1295_s17 = int_to_ptr.vmem [resolvable:$false] %s1294_s17 }
  0x55   : > { %s1296_s7 = scalar_lea.vmem %s1295_s17, 2048  ;;  %p1297_p3 = scmp.lt.s32.totalorder %s1547_s28, %s1295_s17 }
  0x56   : > { %p1292_p11 = pnand %p1290_p8, %p1276_p0  ;;  %p1298_p7 = scmp.lt.s32.totalorder %s1296_s7, %s1289_s30 }
  0x58   : > { %p1293_p13 = pneg %p1292_p11  ;;  %p1299_p9 = por %p1298_p7, %p1297_p3 }
  0x5a   : > { %p1300_p12 = pnand %p1299_p9, %p1293_p13 }
  0x5c   : > { %1303 = shalt.err (!%p1300_p12)
}
  0x5d   : > { %1081 = dma.hbm_to_vmem [thread:$0]  (!%p1549_p10), %s1545_s10, 1024, %s1547_s28, %s1553_s13, %s1378_s15, %s1378_s15, %s1379_s16  }
  0x5e   : > { %p1718_p0 = scmp.ne.s32.totalorder %s1713_s26, 0 }
  0x5f   : > { %s1587_s14 = sand.u32 (!%p1718_p0), 1, %s1366_s19   ;;  %p1719_p5 = scmp.ne.s32.totalorder (!%p1718_p0), %s1711_s24, 0 }
  0x60   : > { %231 = sbr.rel (%p1718_p0) target bundleno = 643 (0x283), region = 40  ;;  %s910_s6 = sshll.u32 (!%p1718_p0), %s1587_s14, 6 }
  0x61   : > { %s234_s8 = scalar_lea.sflag (!%p1718_p0), [#allocation3], %s1587_s14  ;;  %s1591_s9 = scalar_lea.vmem (!%p1718_p0), [#allocation2], %s910_s6 }
  0x67   : > { %1349 = dma.done.wait (%p1719_p5), %s234_s8, 1024  }
  0x68   : > { %1351 = vsyncadd (%p1719_p5), %s234_s8, 4294966272  ;;  %p1720_p10 = scmp.eq.s32.totalorder %s1435_s22, 0 }
  0x6a   : > { %1353 = dma.done.wait (%p1720_p10), [#allocation6], 2048   ;;  %p1721_p1 = pmov %p1720_p10 }
  0x6b   : > { %v1130_v0 = vld [vmem:[#allocation5] sm:$0xff]   ;;  %v1131_v1 = vld [vmem:[#allocation5 + $0x8] sm:$0xff]   ;;  %v1132_v2 = vld [vmem:[#allocation5 + $0x10] sm:$0xff]   ;;  %s913_s15 = sshll.u32 %s1587_s14, 7  ;;  %s962_s12 = sshll.u32 %s1435_s22, 11 }
  0x6c   : > { %1355 = vsyncadd (%p1721_p1), [#allocation6], 4294965248  ;;  %995 = vmatprep.subr.bf16.mxu0 %v1130_v0  ;;  %v1133_v3 = vld [vmem:[#allocation5 + $0x18] sm:$0xff]   ;;  %v1138_v4 = vld [vmem:[%s1591_s9] sm:$0xff]   ;;  %s1634_s28 = scalar_lea.vmem [#allocation8], %s913_s15  ;;  %s1654_s17 = scalar_lea.hbm %s1707_s5, %s962_s12 }
  0x6d   : > { %996 = vmatpush3.bf16.msra.mxu0 %v1130_v0  ;;  %1011 = vmatprep.mubr.bf16.mxu0 %v1138_v4  ;;  %v1134_v5 = vld [vmem:[#allocation5 + $0x20] sm:$0xff]   ;;  %v1135_v6 = vld [vmem:[#allocation5 + $0x28] sm:$0xff]   ;;  %v1136_v7 = vld [vmem:[#allocation5 + $0x30] sm:$0xff]   ;;  %s809_s13 = sshll.u32 %s1634_s28, 4  ;;  %s796_s22 = scalar_lea.sflag [#allocation4], %s1587_s14  ;;  %s1656_s13 = int_to_ptr.vmem [resolvable:$true] %s809_s13 }
  0x6e   : > { %997 = vmatprep.subr.bf16.mxu0 %v1131_v1  ;;  %v1137_v8 = vld [vmem:[#allocation5 + $0x38] sm:$0xff]   ;;  %v1139_v9 = vld [vmem:[%s1591_s9 + $0x8] sm:$0xff]   ;;  %v1140_v10 = vld [vmem:[%s1591_s9 + $0x10] sm:$0xff]   ;;  %s1304_s7 = scalar_lea.vmem %s1656_s13, 2048  ;;  %s1381_s6 = smov [#allocation8]  }
  0x6f   : > { %v1141_v11 = vld [vmem:[%s1591_s9 + $0x18] sm:$0xff]   ;;  %v1142_v12 = vld [vmem:[%s1591_s9 + $0x20] sm:$0xff]   ;;  %v1143_v13 = vld [vmem:[%s1591_s9 + $0x28] sm:$0xff]   ;;  %p1305_p2 = scmp.ne.s32.totalorder %s1656_s13, %s1304_s7  ;;  %s1308_s8 = sshll.u32 %s1381_s6, 4  ;;  %s1309_s8 = int_to_ptr.vmem [resolvable:$false] %s1308_s8 }
  0x70   : > { %v1144_v14 = vld [vmem:[%s1591_s9 + $0x30] sm:$0xff]   ;;  %v1145_v15 = vld [vmem:[%s1591_s9 + $0x38] sm:$0xff]   ;;  %v1146_v16 = vld [vmem:[#allocation7] sm:$0xff]   ;;  %s1310_s9 = scalar_lea.vmem %s1309_s8, 4096  ;;  %p1311_p11 = scmp.lt.s32.totalorder %s1656_s13, %s1309_s8 }
  0x71   : > { %998 = vmatpush3.bf16.msra.mxu0 %v1131_v1  ;;  %1027 = vmatprep.subr.bf16.mxu1 %v1146_v16  ;;  %v1147_v17 = vld [vmem:[#allocation7 + $0x8] sm:$0xff]   ;;  %v1148_v18 = vld [vmem:[#allocation7 + $0x10] sm:$0xff]   ;;  %v1149_v19 = vld [vmem:[#allocation7 + $0x18] sm:$0xff]   ;;  %p1306_p4 = pnand %p1305_p2, %p1532_p6  ;;  %p1312_p13 = scmp.lt.s32.totalorder %s1310_s9, %s1304_s7 }
  0x72   : > { %999 = vmatprep.subr.bf16.mxu0 %v1132_v2  ;;  %1028 = vmatpush3.bf16.msra.mxu1 %v1146_v16  ;;  %v1150_v20 = vld [vmem:[#allocation7 + $0x20] sm:$0xff]   ;;  %v1151_v21 = vld [vmem:[#allocation7 + $0x28] sm:$0xff]   ;;  %v1152_v22 = vld [vmem:[#allocation7 + $0x30] sm:$0xff]  }
  0x73   : > { %1029 = vmatprep.subr.bf16.mxu1 %v1147_v17  ;;  %v1153_v23 = vld [vmem:[#allocation7 + $0x38] sm:$0xff]   ;;  %v1612_v24 = vld [vmem:[%s1704_s2] ss:$0 sm:$0xff]  ;;  %p1307_p8 = pneg %p1306_p4  ;;  %p1313_p3 = por %p1312_p13, %p1311_p11 }
  0x75   : > { %1000 = vmatpush3.bf16.msra.mxu0 %v1132_v2  ;;  %p1314_p7 = pnand %p1313_p3, %p1307_p8 }
  0x76   : > { %1001 = vmatprep.subr.bf16.mxu0 %v1133_v3  ;;  %1030 = vmatpush3.bf16.msra.mxu1 %v1147_v17 }
  0x77   : > { %1031 = vmatprep.subr.bf16.mxu1 %v1148_v18 }
  0x79   : > { %1002 = vmatpush3.bf16.msra.mxu0 %v1133_v3 }
  0x7a   : > { %1003 = vmatprep.subr.bf16.mxu0 %v1134_v5  ;;  %1032 = vmatpush3.bf16.msra.mxu1 %v1148_v18 }
  0x7b   : > { %1033 = vmatprep.subr.bf16.mxu1 %v1149_v19 }
  0x7d   : > { %1004 = vmatpush3.bf16.msra.mxu0 %v1134_v5 }
  0x7e   : > { %1005 = vmatprep.subr.bf16.mxu0 %v1135_v6  ;;  %1034 = vmatpush3.bf16.msra.mxu1 %v1149_v19 }
  0x7f   : > { %1035 = vmatprep.subr.bf16.mxu1 %v1150_v20 }
  0x81   : > { %1006 = vmatpush3.bf16.msra.mxu0 %v1135_v6 }
  0x82   : > { %1007 = vmatprep.subr.bf16.mxu0 %v1136_v7  ;;  %1036 = vmatpush3.bf16.msra.mxu1 %v1150_v20 }
  0x83   : > { %1037 = vmatprep.subr.bf16.mxu1 %v1151_v21 }
  0x85   : > { %1008 = vmatpush3.bf16.msra.mxu0 %v1136_v7 }
  0x86   : > { %1009 = vmatprep.subr.bf16.mxu0 %v1137_v8  ;;  %1038 = vmatpush3.bf16.msra.mxu1 %v1151_v21 }
  0x87   : > { %1039 = vmatprep.subr.bf16.mxu1 %v1152_v22 }
  0x89   : > { %1010 = vmatpush3.bf16.msra.mxu0 %v1137_v8 }
  0x8a   : > { %1040 = vmatpush3.bf16.msra.mxu1 %v1152_v22 }
  0x8b   : > { %1041 = vmatprep.subr.bf16.mxu1 %v1153_v23 }
  0x8c   : > { %1012 = vmatmul.mubr.bf16.vlgmr.msra.gmra.mrb[0].mxu0 %v1139_v9 }
  0x8d   : > { %1015 = vmatprep.mubr.bf16.mxu0 %v1140_v10 }
  0x8e   : > { %1042 = vmatpush3.bf16.msra.mxu1 %v1153_v23 }
  0x94   : > { %1016 = vmatmul.mubr.bf16.gmra.mrb[4].mxu0 %v1141_v11 }
  0x95   : > { %1019 = vmatprep.mubr.bf16.mxu0 %v1142_v12 }
  0x9c   : > { %1020 = vmatmul.mubr.bf16.gmra.mrb[8].mxu0 %v1143_v13 }
  0x9d   : > { %1023 = vmatprep.mubr.bf16.mxu0 %v1144_v14 }
  0xa4   : > { %1024 = vmatmul.mubr.bf16.gmra.mrb[12].mxu0 %v1145_v15 }
 0x15f   : > { %v1013_v25 = vpop.f32.mrb[0].mxu0 }
 0x160   : > { %v453_v26 = vadd.f32 %v1013_v25, %v1612_v24  ;;  %v444_v27 = vpop.f32.mrb[1].mxu0 }
 0x161   : > { %v445_v28 = vadd.f32 %v1612_v24, %v444_v27  ;;  %v1014_v29 = vpop.f32.mrb[2].mxu0 }
 0x162   : > { %v933_v30 = vmul.f32 -1.442695, %v453_v26  ;;  %v456_v31 = vadd.f32 %v1014_v29, %v1612_v24  ;;  %v447_v32 = vpop.f32.mrb[3].mxu0 }
 0x163   : > { %v931_v33 = vmul.f32 -1.442695, %v445_v28  ;;  %v448_v34 = vadd.f32 %v1612_v24, %v447_v32 }
 0x164   : > { %1154 = vpow2.f32 %v933_v30  ;;  %v934_v35 = vmul.f32 -1.442695, %v456_v31 }
 0x165   : > { %1156 = vpow2.f32 %v931_v33  ;;  %v932_v36 = vmul.f32 -1.442695, %v448_v34 }
 0x166   : > { %1158 = vpow2.f32 %v934_v35 }
 0x167   : > { %1160 = vpow2.f32 %v932_v36  ;;  %v1017_v37 = vpop.f32.mrb[4].mxu0 }
 0x168   : > { %v469_v38 = vadd.f32 %v1017_v37, %v1612_v24  ;;  %v460_v39 = vpop.f32.mrb[5].mxu0 }
 0x169   : > { %v461_v40 = vadd.f32 %v1612_v24, %v460_v39  ;;  %v1018_v41 = vpop.f32.mrb[6].mxu0 }
 0x16a   : > { %v937_v42 = vmul.f32 -1.442695, %v469_v38  ;;  %v472_v43 = vadd.f32 %v1018_v41, %v1612_v24  ;;  %v463_v44 = vpop.f32.mrb[7].mxu0 }
 0x16b   : > { %v935_v45 = vmul.f32 -1.442695, %v461_v40  ;;  %v464_v46 = vadd.f32 %v1612_v24, %v463_v44 }
 0x16c   : > { %1162 = vpow2.f32 %v937_v42  ;;  %v938_v47 = vmul.f32 -1.442695, %v472_v43 }
 0x16d   : > { %1164 = vpow2.f32 %v935_v45  ;;  %v936_v48 = vmul.f32 -1.442695, %v464_v46 }
 0x16e   : > { %v1155_v49 = vpop.eup %1154  ;;  %1166 = vpow2.f32 %v938_v47 }
 0x16f   : > { %v1157_v50 = vpop.eup %1156  ;;  %v557_v51 = vadd.f32 1.0, %v1155_v49  ;;  %1168 = vpow2.f32 %v936_v48  ;;  %v1021_v52 = vpop.f32.mrb[8].mxu0 }
 0x170   : > { %v1159_v53 = vpop.eup %1158  ;;  %v555_v54 = vadd.f32 1.0, %v1157_v50  ;;  %v485_v55 = vadd.f32 %v1021_v52, %v1612_v24  ;;  %v476_v56 = vpop.f32.mrb[9].mxu0 }
 0x171   : > { %v1161_v57 = vpop.eup %1160  ;;  %1170 = vrcp.f32 %v557_v51  ;;  %v558_v58 = vadd.f32 1.0, %v1159_v53  ;;  %v477_v59 = vadd.f32 %v1612_v24, %v476_v56  ;;  %v1022_v60 = vpop.f32.mrb[10].mxu0 }
 0x172   : > { %1172 = vrcp.f32 %v555_v54  ;;  %v556_v61 = vadd.f32 1.0, %v1161_v57  ;;  %v941_v62 = vmul.f32 -1.442695, %v485_v55  ;;  %v488_v63 = vadd.f32 %v1022_v60, %v1612_v24  ;;  %v479_v0 = vpop.f32.mrb[11].mxu0 }
 0x173   : > { %1174 = vrcp.f32 %v558_v58  ;;  %v939_v1 = vmul.f32 -1.442695, %v477_v59  ;;  %v480_v2 = vadd.f32 %v1612_v24, %v479_v0 }
 0x174   : > { %1176 = vrcp.f32 %v556_v61  ;;  %v942_v3 = vmul.f32 -1.442695, %v488_v63 }
 0x175   : > { %1178 = vpow2.f32 %v941_v62  ;;  %v940_v4 = vmul.f32 -1.442695, %v480_v2 }
 0x176   : > { %v1163_v5 = vpop.eup %1162  ;;  %1180 = vpow2.f32 %v939_v1  ;;  %v947_v1 = vld [vmem:[%s1706_s4] ss:$0 sm:$0xff] }
 0x177   : > { %v1165_v6 = vpop.eup %1164  ;;  %v561_v7 = vadd.f32 1.0, %v1163_v5  ;;  %1182 = vpow2.f32 %v942_v3  ;;  %v1025_v8 = vpop.f32.mrb[12].mxu0 }
 0x178   : > { %v1167_v9 = vpop.eup %1166  ;;  %v559_v10 = vadd.f32 1.0, %v1165_v6  ;;  %1184 = vpow2.f32 %v940_v4  ;;  %v501_v11 = vadd.f32 %v1025_v8, %v1612_v24  ;;  %v492_v12 = vpop.f32.mrb[13].mxu0 }
 0x179   : > { %v1169_v13 = vpop.eup %1168  ;;  %1186 = vrcp.f32 %v561_v7  ;;  %v562_v14 = vadd.f32 1.0, %v1167_v9  ;;  %v493_v15 = vadd.f32 %v1612_v24, %v492_v12  ;;  %v1026_v16 = vpop.f32.mrb[14].mxu0 }
 0x17a   : > { %1188 = vrcp.f32 %v559_v10  ;;  %v560_v17 = vadd.f32 1.0, %v1169_v13  ;;  %v945_v18 = vmul.f32 -1.442695, %v501_v11  ;;  %v504_v19 = vadd.f32 %v1026_v16, %v1612_v24  ;;  %v495_v20 = vpop.f32.mrb[15].mxu0 }
 0x17b   : > { %v1171_v21 = vpop.eup %1170  ;;  %1190 = vrcp.f32 %v562_v14  ;;  %v943_v22 = vmul.f32 -1.442695, %v493_v15  ;;  %v496_v23 = vadd.f32 %v1612_v24, %v495_v20 }
 0x17c   : > { %v1173_v25 = vpop.eup %1172  ;;  %1192 = vrcp.f32 %v560_v17  ;;  %v946_v26 = vmul.f32 -1.442695, %v504_v19 }
 0x17d   : > { %v1175_v27 = vpop.eup %1174  ;;  %1194 = vpow2.f32 %v945_v18  ;;  %v944_v28 = vmul.f32 -1.442695, %v496_v23 }
 0x17e   : > { %v1177_v29 = vpop.eup %1176  ;;  %1196 = vpow2.f32 %v943_v22  ;;  %v604_v30 = vpack.c.bf16 %v1175_v27, %v1171_v21 }
 0x17f   : > { %v1179_v31 = vpop.eup %1178  ;;  %1198 = vpow2.f32 %v946_v26  ;;  %v603_v32 = vpack.c.bf16 %v1177_v29, %v1173_v25 }
 0x180   : > { %v1181_v33 = vpop.eup %1180  ;;  %v565_v34 = vadd.f32 1.0, %v1179_v31  ;;  %1200 = vpow2.f32 %v944_v28 }
 0x181   : > { %v1183_v35 = vpop.eup %1182  ;;  %v563_v36 = vadd.f32 1.0, %v1181_v33  ;;  %1043 = vmatprep.mubr.bf16.mxu1 %v603_v32 }
 0x182   : > { %v1185_v37 = vpop.eup %1184  ;;  %1202 = vrcp.f32 %v565_v34  ;;  %v566_v24 = vadd.f32 1.0, %v1183_v35  ;;  %1044 = vmatmul.mubr.bf16.vlgmr.msra.gmra.mrb[0].mxu1 %v604_v30 }
 0x183   : > { %v1187_v38 = vpop.eup %1186  ;;  %1204 = vrcp.f32 %v563_v36  ;;  %v564_v39 = vadd.f32 1.0, %v1185_v37 }
 0x184   : > { %v1189_v40 = vpop.eup %1188  ;;  %1206 = vrcp.f32 %v566_v24 }
 0x185   : > { %v1191_v41 = vpop.eup %1190  ;;  %1208 = vrcp.f32 %v564_v39 }
 0x186   : > { %v1193_v42 = vpop.eup %1192  ;;  %v606_v43 = vpack.c.bf16 %v1191_v41, %v1187_v38 }
 0x187   : > { %v1195_v44 = vpop.eup %1194  ;;  %v605_v45 = vpack.c.bf16 %v1193_v42, %v1189_v40 }
 0x188   : > { %v1197_v46 = vpop.eup %1196  ;;  %v569_v47 = vadd.f32 1.0, %v1195_v44 }
 0x189   : > { %v1199_v48 = vpop.eup %1198  ;;  %v567_v49 = vadd.f32 1.0, %v1197_v46  ;;  %1047 = vmatprep.mubr.bf16.mxu1 %v605_v45 }
 0x18a   : > { %v1201_v50 = vpop.eup %1200  ;;  %1210 = vrcp.f32 %v569_v47  ;;  %v570_v51 = vadd.f32 1.0, %v1199_v48  ;;  %1048 = vmatmul.mubr.bf16.gmra.mrb[4].mxu1 %v606_v43 }
 0x18b   : > { %1212 = vrcp.f32 %v567_v49  ;;  %v568_v52 = vadd.f32 1.0, %v1201_v50 }
 0x18c   : > { %v1203_v53 = vpop.eup %1202  ;;  %1214 = vrcp.f32 %v570_v51 }
 0x18d   : > { %v1205_v54 = vpop.eup %1204  ;;  %1216 = vrcp.f32 %v568_v52 }
 0x18e   : > { %v1207_v55 = vpop.eup %1206 }
 0x18f   : > { %v1209_v56 = vpop.eup %1208  ;;  %v608_v57 = vpack.c.bf16 %v1207_v55, %v1203_v53 }
 0x190   : > { %v607_v58 = vpack.c.bf16 %v1209_v56, %v1205_v54 }
 0x192   : > { %1051 = vmatprep.mubr.bf16.mxu1 %v607_v58 }
 0x193   : > { %1052 = vmatmul.mubr.bf16.gmra.mrb[8].mxu1 %v608_v57 }
 0x194   : > { %v1211_v59 = vpop.eup %1210 }
 0x195   : > { %v1213_v60 = vpop.eup %1212 }
 0x196   : > { %v1215_v61 = vpop.eup %1214 }
 0x197   : > { %v1217_v62 = vpop.eup %1216  ;;  %v610_v63 = vpack.c.bf16 %v1215_v61, %v1211_v59 }
 0x198   : > { %v609_v0 = vpack.c.bf16 %v1217_v62, %v1213_v60 }
 0x19a   : > { %1055 = vmatprep.mubr.bf16.mxu1 %v609_v0 }
 0x19b   : > { %1056 = vmatmul.mubr.bf16.gmra.mrb[12].mxu1 %v610_v63 }
 0x255   : > { %v1045_v2 = vpop.f32.mrb[0].mxu1 }
 0x256   : > { %v725_v3 = vadd.f32 %v1045_v2, %v947_v1  ;;  %v716_v4 = vpop.f32.mrb[1].mxu1 }
 0x257   : > { %v717_v5 = vadd.f32 %v947_v1, %v716_v4  ;;  %v1046_v6 = vpop.f32.mrb[2].mxu1 }
 0x258   : > { %781 = vst [vmem:[%s1634_s28 + $0x10] sm:$0xff] %v725_v3  ;;  %v728_v7 = vadd.f32 %v1046_v6, %v947_v1  ;;  %v719_v8 = vpop.f32.mrb[3].mxu1 }
 0x259   : > { %779 = vst [vmem:[%s1634_s28] sm:$0xff] %v717_v5  ;;  %v720_v9 = vadd.f32 %v947_v1, %v719_v8 }
 0x25a   : > { %782 = vst [vmem:[%s1634_s28 + $0x18] sm:$0xff] %v728_v7 }
 0x25b   : > { %780 = vst [vmem:[%s1634_s28 + $0x8] sm:$0xff] %v720_v9 }
 0x25d   : > { %v1049_v10 = vpop.f32.mrb[4].mxu1 }
 0x25e   : > { %v741_v11 = vadd.f32 %v1049_v10, %v947_v1  ;;  %v732_v12 = vpop.f32.mrb[5].mxu1 }
 0x25f   : > { %v733_v13 = vadd.f32 %v947_v1, %v732_v12  ;;  %v1050_v14 = vpop.f32.mrb[6].mxu1 }
 0x260   : > { %785 = vst [vmem:[%s1634_s28 + $0x30] sm:$0xff] %v741_v11  ;;  %v744_v15 = vadd.f32 %v1050_v14, %v947_v1  ;;  %v735_v16 = vpop.f32.mrb[7].mxu1 }
 0x261   : > { %783 = vst [vmem:[%s1634_s28 + $0x20] sm:$0xff] %v733_v13  ;;  %v736_v17 = vadd.f32 %v947_v1, %v735_v16 }
 0x262   : > { %786 = vst [vmem:[%s1634_s28 + $0x38] sm:$0xff] %v744_v15 }
 0x263   : > { %784 = vst [vmem:[%s1634_s28 + $0x28] sm:$0xff] %v736_v17 }
 0x266   : > { %v1053_v18 = vpop.f32.mrb[8].mxu1 }
 0x267   : > { %v757_v19 = vadd.f32 %v1053_v18, %v947_v1  ;;  %v748_v20 = vpop.f32.mrb[9].mxu1 }
 0x268   : > { %v749_v21 = vadd.f32 %v947_v1, %v748_v20  ;;  %v1054_v22 = vpop.f32.mrb[10].mxu1 }
 0x269   : > { %789 = vst [vmem:[%s1634_s28 + $0x50] sm:$0xff] %v757_v19  ;;  %v760_v23 = vadd.f32 %v1054_v22, %v947_v1  ;;  %v751_v25 = vpop.f32.mrb[11].mxu1 }
 0x26a   : > { %787 = vst [vmem:[%s1634_s28 + $0x40] sm:$0xff] %v749_v21  ;;  %v752_v26 = vadd.f32 %v947_v1, %v751_v25 }
 0x26b   : > { %790 = vst [vmem:[%s1634_s28 + $0x58] sm:$0xff] %v760_v23 }
 0x26c   : > { %788 = vst [vmem:[%s1634_s28 + $0x48] sm:$0xff] %v752_v26 }
 0x26e   : > { %v1057_v27 = vpop.f32.mrb[12].mxu1 }
 0x26f   : > { %v773_v28 = vadd.f32 %v1057_v27, %v947_v1  ;;  %v764_v29 = vpop.f32.mrb[13].mxu1 }
 0x270   : > { %v765_v30 = vadd.f32 %v947_v1, %v764_v29  ;;  %v1058_v31 = vpop.f32.mrb[14].mxu1 }
 0x271   : > { %793 = vst [vmem:[%s1634_s28 + $0x70] sm:$0xff] %v773_v28  ;;  %v776_v32 = vadd.f32 %v1058_v31, %v947_v1  ;;  %v767_v33 = vpop.f32.mrb[15].mxu1 }
 0x272   : > { %791 = vst [vmem:[%s1634_s28 + $0x60] sm:$0xff] %v765_v30  ;;  %v768_v34 = vadd.f32 %v947_v1, %v767_v33 }
 0x273   : > { %794 = vst [vmem:[%s1634_s28 + $0x78] sm:$0xff] %v776_v32 }
 0x274   : > { %792 = vst [vmem:[%s1634_s28 + $0x68] sm:$0xff] %v768_v34 }
 0x275   : > { %1317 = shalt.err (!%p1314_p7)
}
 0x276   : > { %s1318_s24 = scalar_lea.hbm %s1654_s17, 2048  ;;  %s1322_s16 = scalar_lea.hbm %s1707_s5, 16384 }
 0x277   : > { %p1319_p9 = scmp.ne.s32.totalorder %s1654_s17, %s1318_s24  ;;  %p1323_p5 = scmp.lt.u32.totalorder %s1654_s17, %s1707_s5 }
 0x278   : > { %p1324_p10 = scmp.lt.u32.totalorder %s1322_s16, %s1318_s24  ;;  %p1326_p2 = scmp.lt.u32.totalorder %s1318_s24, %s1654_s17 }
 0x279   : > { %p1320_p12 = pnand %p1319_p9, %p1532_p6 }
 0x27a   : > { %p1325_p1 = por %p1324_p10, %p1323_p5 }
 0x27b   : > { %p1321_p0 = pneg %p1320_p12 }
 0x27c   : > { %p1327_p4 = por %p1326_p2, %p1325_p1 }
 0x27e   : > { %p1328_p8 = pnand %p1327_p4, %p1321_p0 }
 0x280   : > { %1331 = shalt.err (!%p1328_p8)
}
 0x281   : > { %s1382_s12 = smov 128   ;;  %s1383_s30 = smov 8  }
 0x282   : > { %1069 = dma.vmem_to_hbm [thread:$0]  (%p1532_p6), %s1656_s13, 2048, %s1654_s17, %s796_s22, %s1382_s12, %s1382_s12, %s1383_s30  }
 0x283 PF: > { %p1091_p11 = scmp.ge.s32.totalorder %s1374_s21, 2  ;;  %s824_s11 = sand.u32 1, %s1362_s18  }
 0x284   : > { %p1722_p13 = scmp.ne.s32.totalorder %s1712_s25, 0  ;;  %s825_s7 = scalar_lea.sflag [#allocation4], %s824_s11 }
 0x286   : > { %p1083_p3 = pnand %p1091_p11, %p1722_p13 }
 0x288   : > { %1357 = dma.done.wait (!%p1083_p3), %s825_s7, 2048  }
 0x289   : > { %1359 = vsyncadd (!%p1083_p3), %s825_s7, 4294965248  ;;  %p19_p7 = scmp.ge.s32.totalorder %s1522_s29, 10   ;;  %s1723_s18 = smov %s1366_s19 }
 0x28a   : > { %s1724_s19 = smov %s1370_s20  ;;  %s1725_s20 = smov %s1538_s27 }
 0x28b   : > { %s1726_s21 = smov %s1522_s29  ;;  %21 = sbr.rel (!%p19_p7) target bundleno = 6 (0x6), region = 93 }
 0x292   :  { %830 = vsyncpa [#allocation3], 1 }
 0x293   :  { %832 = vsyncpa [#allocation3 + $0x1], 1 }
 0x294   :  { %833 = vsyncpa [#allocation6], 1 }
 0x295   :  { %834 = vsyncpa [#allocation4], 1 }
 0x296   :  { %836 = vsyncpa [#allocation4 + $0x1], 1 }

</bundles_post_ra>
